<compile_context>
chip_gen: v6e
topology: v6e:2x2x1
jax: 0.10.0
libtpu: 0.0.40
codegen_flags: <defaults>
</compile_context>

<pallas_src>
import math
import functools

import jax
import jax.numpy as jnp
from jax.experimental import pallas as pl
from jax.experimental.pallas import tpu as pltpu


def _lambertw0(z, n_iter=4):
    """Principal branch W0(z) for z >= -1/e, elementwise, via Halley iterations."""
    e = jnp.float32(math.e)
    # initial guess: branch-point series for z < 0, log1p for z >= 0
    p = jnp.sqrt(jnp.maximum(2.0 * (e * z + 1.0), 0.0))
    w_branch = -1.0 + p - p * p / 3.0 + (11.0 / 72.0) * p * p * p
    w_pos = jnp.log1p(jnp.maximum(z, 0.0))
    w = jnp.where(z < 0.0, w_branch, w_pos)
    for _ in range(n_iter):
        ew = jnp.exp(w)                                     # EUP slot
        f = w * ew - z
        w = w - f / (ew * (w + 1.0) - (w + 2.0) * f / (2.0 * w + 2.0))
    return w


def _superloss_kernel(logits_ref, targets_ref, out_ref, *, tau, lam, n_valid, block_b):
    # logits tile: (C, block_b)  -- classes on sublanes, batch on lanes
    logits = logits_ref[...].astype(jnp.float32)
    tgt = targets_ref[...]                                   # (1, block_b) int32
    C, TB = logits.shape

    # ---- per-sample cross entropy, reductions over the class (sublane) axis ----
    m = jnp.max(logits, axis=0, keepdims=True)               # (1, TB)
    lse = m + jnp.log(jnp.sum(jnp.exp(logits - m), axis=0, keepdims=True))
    cls_idx = jax.lax.broadcasted_iota(jnp.int32, (C, TB), 0)
    tgt_logit = jnp.sum(jnp.where(cls_idx == tgt, logits, 0.0), axis=0, keepdims=True)
    l_i = lse - tgt_logit                                    # (1, TB), lane-dense

    # ---- sigma = exp(-W0(y)),  y = 0.5 * max(-2/e, (l_i - tau)/lam) ----
    y = 0.5 * jnp.maximum(jnp.float32(-2.0 / math.e), (l_i - tau) / lam)
    # keep strictly inside the real domain of W0 (matches scipy's .real at the edge)
    z = jnp.maximum(y, jnp.float32((-1.0 / math.e) * (1.0 - 1e-6)))
    w = _lambertw0(z)
    sigma = jnp.exp(-w)                                      # log(sigma) = -w

    # ---- per-sample SuperLoss, masked for padded batch columns ----
    loss_i = (l_i - tau) * sigma + lam * (w * w)             # (1, TB)
    col = pl.program_id(0) * block_b + jax.lax.broadcasted_iota(jnp.int32, (1, TB), 1)
    out_ref[...] = jnp.where(col < n_valid, loss_i, 0.0)


def superloss(logits, targets, C=10, lam=1.0, batch_size=128, max_block_b=512):
    """Pallas implementation of SuperLoss.forward(logits, targets)."""
    tau = math.log(C)
    B, num_classes = logits.shape

    # Lane tile is 128; use up to max_block_b lanes per grid step but never more
    # than the 128-aligned batch (avoids wasteful padding for small batches).
    b_aligned = ((B + 127) // 128) * 128
    block_b = min(max_block_b, b_aligned)
    b_pad = ((B + block_b - 1) // block_b) * block_b

    # go lane-dense: (B, C) -> (C, B_pad), targets -> (1, B_pad)
    logits_t = jnp.transpose(logits)                         # keep caller dtype
    targets_i = targets.astype(jnp.int32)
    if b_pad != B:
        logits_t = jnp.pad(logits_t, ((0, 0), (0, b_pad - B)))
        targets_i = jnp.pad(targets_i, (0, b_pad - B))
    tgt2d = targets_i.reshape(1, b_pad)

    grid = (b_pad // block_b,)
    kernel = functools.partial(
        _superloss_kernel, tau=tau, lam=float(lam), n_valid=B, block_b=block_b
    )
    per_sample = pl.pallas_call(
        kernel,
        out_shape=jax.ShapeDtypeStruct((1, b_pad), jnp.float32),
        grid_spec=pltpu.PrefetchScalarGridSpec(
            num_scalar_prefetch=0,
            grid=grid,
            in_specs=[
                pl.BlockSpec((num_classes, block_b), lambda i: (0, i)),
                pl.BlockSpec((1, block_b), lambda i: (0, i)),
            ],
            out_specs=pl.BlockSpec((1, block_b), lambda i: (0, i)),
        ),
        compiler_params=pltpu.CompilerParams(
            dimension_semantics=("parallel",)
        ),
    )(logits_t, tgt2d)
    # tiny final reduction (padded columns are already zeroed in-kernel)
    return jnp.sum(per_sample) / jnp.float32(batch_size)


def _superloss_reference(logits, targets, C=10, lam=1.0, batch_size=128):
    """Pure-JAX reference (same math, no Pallas, more W0 iterations)."""
    tau = math.log(C)
    lg = logits.astype(jnp.float32)
    lse = jax.nn.logsumexp(lg, axis=-1)
    l_i = lse - jnp.take_along_axis(lg, targets[:, None].astype(jnp.int32), axis=-1)[:, 0]
    y = 0.5 * jnp.maximum(-2.0 / math.e, (l_i - tau) / lam)
    z = jnp.maximum(y, (-1.0 / math.e) * (1.0 - 1e-6))
    w = _lambertw0(z, n_iter=10)
    sigma = jnp.exp(-w)
    loss = (l_i - tau) * sigma + lam * w ** 2
    return jnp.sum(loss) / batch_size


if __name__ == "__main__":
    key = jax.random.PRNGKey(0)

    # ---- small test matching the module defaults (C = 10 classes) ----
    k1, k2, k3, k4 = jax.random.split(key, 4)
    B, C = 8, 10
    logits = jax.random.normal(k1, (B, C), dtype=jnp.float32)
    targets = jax.random.randint(k2, (B,), 0, C, dtype=jnp.int32)

    loss = superloss(logits, targets, C=C, lam=1.0, batch_size=B)
    jax.block_until_ready(loss)
    ref = _superloss_reference(logits, targets, C=C, lam=1.0, batch_size=B)
    assert jnp.allclose(loss, ref, rtol=1e-4, atol=1e-4), (loss, ref)

    # ---- second test exercising the batch grid + padding/mask path ----
    B2 = 300
    logits2 = 3.0 * jax.random.normal(k3, (B2, C), dtype=jnp.float32)
    targets2 = jax.random.randint(k4, (B2,), 0, C, dtype=jnp.int32)

    loss2 = superloss(logits2, targets2, C=C, lam=1.0, batch_size=128)
    jax.block_until_ready(loss2)
    ref2 = _superloss_reference(logits2, targets2, C=C, lam=1.0, batch_size=128)
    assert jnp.allclose(loss2, ref2, rtol=1e-4, atol=1e-4), (loss2, ref2)

    # ---- third test: bf16 logits, batch larger than one block (grid > 1) ----
    B3 = 1500
    logits3 = (2.0 * jax.random.normal(k3, (B3, C), dtype=jnp.float32)).astype(jnp.bfloat16)
    targets3 = jax.random.randint(k4, (B3,), 0, C, dtype=jnp.int32)
    loss3 = superloss(logits3, targets3, C=C, lam=1.0, batch_size=128)
    jax.block_until_ready(loss3)
    ref3 = _superloss_reference(logits3.astype(jnp.float32), targets3, C=C, lam=1.0, batch_size=128)
    assert jnp.allclose(loss3, ref3, rtol=5e-3, atol=5e-3), (loss3, ref3)

    print("KERNEL_OK")
</pallas_src>

<mosaic_0001>
module attributes {stable_mosaic.version = 11 : i64} {
  func.func @_superloss_kernel(%arg0: i32, %arg1: memref<10x128xf32, #tpu.memory_space<vmem>>, %arg2: memref<1x128xi32, #tpu.memory_space<vmem>>, %arg3: memref<1x128xf32, #tpu.memory_space<vmem>>) attributes {dimension_semantics = [#tpu.dimension_semantics<parallel>], iteration_bounds = array<i64: 1>, scalar_prefetch = 0 : i64, scratch_operands = 0 : i64, tpu.core_type = #tpu.core_type<tc>, window_params = [{transform_indices = @transform_0, window_bounds = array<i64: 10, 128>}, {transform_indices = @transform_1, window_bounds = array<i64: 1, 128>}, {transform_indices = @transform_2, window_bounds = array<i64: 1, 128>}]} {
    %c0 = arith.constant 0 : index
    %c0_0 = arith.constant 0 : index
    %0 = vector.load %arg1[%c0, %c0_0] : memref<10x128xf32, #tpu.memory_space<vmem>>, vector<10x128xf32>
    %c0_1 = arith.constant 0 : index
    %c0_2 = arith.constant 0 : index
    %1 = vector.load %arg2[%c0_1, %c0_2] : memref<1x128xi32, #tpu.memory_space<vmem>>, vector<1x128xi32>
    %cst = arith.constant dense<0xFF800000> : vector<128xf32>
    %2 = vector.multi_reduction <maximumf>, %0, %cst [0] : vector<10x128xf32> to vector<128xf32>
    %3 = vector.shape_cast %2 : vector<128xf32> to vector<1x128xf32>
    %4 = vector.broadcast %3 : vector<1x128xf32> to vector<10x128xf32>
    %5 = arith.subf %0, %4 : vector<10x128xf32>
    %6 = math.exp %5 : vector<10x128xf32>
    %cst_3 = arith.constant dense<0.000000e+00> : vector<128xf32>
    %7 = vector.multi_reduction <add>, %6, %cst_3 [0] : vector<10x128xf32> to vector<128xf32>
    %8 = vector.shape_cast %7 : vector<128xf32> to vector<1x128xf32>
    %9 = math.log %8 : vector<1x128xf32>
    %10 = arith.addf %3, %9 : vector<1x128xf32>
    %11 = tpu.iota {dimensions = array<i32: 0>} : vector<10x128xi32>
    %12 = vector.broadcast %1 : vector<1x128xi32> to vector<10x128xi32>
    %13 = arith.cmpi eq, %11, %12 : vector<10x128xi32>
    %cst_4 = arith.constant 0.000000e+00 : f32
    %14 = vector.broadcast %cst_4 : f32 to vector<10x128xf32>
    %15 = arith.select %13, %0, %14 : vector<10x128xi1>, vector<10x128xf32>
    %cst_5 = arith.constant dense<0.000000e+00> : vector<128xf32>
    %16 = vector.multi_reduction <add>, %15, %cst_5 [0] : vector<10x128xf32> to vector<128xf32>
    %17 = vector.shape_cast %16 : vector<128xf32> to vector<1x128xf32>
    %18 = arith.subf %10, %17 : vector<1x128xf32>
    %cst_6 = arith.constant 2.30258512 : f32
    %19 = vector.broadcast %cst_6 : f32 to vector<1x128xf32>
    %20 = arith.subf %18, %19 : vector<1x128xf32>
    %cst_7 = arith.constant 1.000000e+00 : f32
    %21 = vector.broadcast %cst_7 : f32 to vector<1x128xf32>
    %22 = arith.divf %20, %21 : vector<1x128xf32>
    %cst_8 = arith.constant -0.735758901 : f32
    %23 = vector.broadcast %cst_8 : f32 to vector<1x128xf32>
    %24 = arith.maximumf %23, %22 : vector<1x128xf32>
    %cst_9 = arith.constant 5.000000e-01 : f32
    %25 = vector.broadcast %cst_9 : f32 to vector<1x128xf32>
    %26 = arith.mulf %25, %24 : vector<1x128xf32>
    %cst_10 = arith.constant -0.367879063 : f32
    %27 = vector.broadcast %cst_10 : f32 to vector<1x128xf32>
    %28 = arith.maximumf %26, %27 : vector<1x128xf32>
    %cst_11 = arith.constant 2.71828175 : f32
    %29 = vector.broadcast %cst_11 : f32 to vector<1x128xf32>
    %30 = arith.mulf %29, %28 : vector<1x128xf32>
    %cst_12 = arith.constant 1.000000e+00 : f32
    %31 = vector.broadcast %cst_12 : f32 to vector<1x128xf32>
    %32 = arith.addf %30, %31 : vector<1x128xf32>
    %cst_13 = arith.constant 2.000000e+00 : f32
    %33 = vector.broadcast %cst_13 : f32 to vector<1x128xf32>
    %34 = arith.mulf %33, %32 : vector<1x128xf32>
    %cst_14 = arith.constant 0.000000e+00 : f32
    %35 = vector.broadcast %cst_14 : f32 to vector<1x128xf32>
    %36 = arith.maximumf %34, %35 : vector<1x128xf32>
    %37 = math.sqrt %36 : vector<1x128xf32>
    %cst_15 = arith.constant -1.000000e+00 : f32
    %38 = vector.broadcast %cst_15 : f32 to vector<1x128xf32>
    %39 = arith.addf %38, %37 : vector<1x128xf32>
    %40 = arith.mulf %37, %37 : vector<1x128xf32>
    %cst_16 = arith.constant 3.000000e+00 : f32
    %41 = vector.broadcast %cst_16 : f32 to vector<1x128xf32>
    %42 = arith.divf %40, %41 : vector<1x128xf32>
    %43 = arith.subf %39, %42 : vector<1x128xf32>
    %cst_17 = arith.constant 0.152777776 : f32
    %44 = vector.broadcast %cst_17 : f32 to vector<1x128xf32>
    %45 = arith.mulf %44, %37 : vector<1x128xf32>
    %46 = arith.mulf %45, %37 : vector<1x128xf32>
    %47 = arith.mulf %46, %37 : vector<1x128xf32>
    %48 = arith.addf %43, %47 : vector<1x128xf32>
    %cst_18 = arith.constant 0.000000e+00 : f32
    %49 = vector.broadcast %cst_18 : f32 to vector<1x128xf32>
    %50 = arith.maximumf %28, %49 : vector<1x128xf32>
    %51 = math.log1p %50 : vector<1x128xf32>
    %cst_19 = arith.constant 0.000000e+00 : f32
    %52 = vector.broadcast %cst_19 : f32 to vector<1x128xf32>
    %53 = arith.cmpf olt, %28, %52 : vector<1x128xf32>
    %54 = arith.select %53, %48, %51 : vector<1x128xi1>, vector<1x128xf32>
    %55 = math.exp %54 : vector<1x128xf32>
    %56 = arith.mulf %54, %55 : vector<1x128xf32>
    %57 = arith.subf %56, %28 : vector<1x128xf32>
    %cst_20 = arith.constant 1.000000e+00 : f32
    %58 = vector.broadcast %cst_20 : f32 to vector<1x128xf32>
    %59 = arith.addf %54, %58 : vector<1x128xf32>
    %60 = arith.mulf %55, %59 : vector<1x128xf32>
    %cst_21 = arith.constant 2.000000e+00 : f32
    %61 = vector.broadcast %cst_21 : f32 to vector<1x128xf32>
    %62 = arith.addf %54, %61 : vector<1x128xf32>
    %63 = arith.mulf %62, %57 : vector<1x128xf32>
    %cst_22 = arith.constant 2.000000e+00 : f32
    %64 = vector.broadcast %cst_22 : f32 to vector<1x128xf32>
    %65 = arith.mulf %64, %54 : vector<1x128xf32>
    %cst_23 = arith.constant 2.000000e+00 : f32
    %66 = vector.broadcast %cst_23 : f32 to vector<1x128xf32>
    %67 = arith.addf %65, %66 : vector<1x128xf32>
    %68 = arith.divf %63, %67 : vector<1x128xf32>
    %69 = arith.subf %60, %68 : vector<1x128xf32>
    %70 = arith.divf %57, %69 : vector<1x128xf32>
    %71 = arith.subf %54, %70 : vector<1x128xf32>
    %72 = math.exp %71 : vector<1x128xf32>
    %73 = arith.mulf %71, %72 : vector<1x128xf32>
    %74 = arith.subf %73, %28 : vector<1x128xf32>
    %cst_24 = arith.constant 1.000000e+00 : f32
    %75 = vector.broadcast %cst_24 : f32 to vector<1x128xf32>
    %76 = arith.addf %71, %75 : vector<1x128xf32>
    %77 = arith.mulf %72, %76 : vector<1x128xf32>
    %cst_25 = arith.constant 2.000000e+00 : f32
    %78 = vector.broadcast %cst_25 : f32 to vector<1x128xf32>
    %79 = arith.addf %71, %78 : vector<1x128xf32>
    %80 = arith.mulf %79, %74 : vector<1x128xf32>
    %cst_26 = arith.constant 2.000000e+00 : f32
    %81 = vector.broadcast %cst_26 : f32 to vector<1x128xf32>
    %82 = arith.mulf %81, %71 : vector<1x128xf32>
    %cst_27 = arith.constant 2.000000e+00 : f32
    %83 = vector.broadcast %cst_27 : f32 to vector<1x128xf32>
    %84 = arith.addf %82, %83 : vector<1x128xf32>
    %85 = arith.divf %80, %84 : vector<1x128xf32>
    %86 = arith.subf %77, %85 : vector<1x128xf32>
    %87 = arith.divf %74, %86 : vector<1x128xf32>
    %88 = arith.subf %71, %87 : vector<1x128xf32>
    %89 = math.exp %88 : vector<1x128xf32>
    %90 = arith.mulf %88, %89 : vector<1x128xf32>
    %91 = arith.subf %90, %28 : vector<1x128xf32>
    %cst_28 = arith.constant 1.000000e+00 : f32
    %92 = vector.broadcast %cst_28 : f32 to vector<1x128xf32>
    %93 = arith.addf %88, %92 : vector<1x128xf32>
    %94 = arith.mulf %89, %93 : vector<1x128xf32>
    %cst_29 = arith.constant 2.000000e+00 : f32
    %95 = vector.broadcast %cst_29 : f32 to vector<1x128xf32>
    %96 = arith.addf %88, %95 : vector<1x128xf32>
    %97 = arith.mulf %96, %91 : vector<1x128xf32>
    %cst_30 = arith.constant 2.000000e+00 : f32
    %98 = vector.broadcast %cst_30 : f32 to vector<1x128xf32>
    %99 = arith.mulf %98, %88 : vector<1x128xf32>
    %cst_31 = arith.constant 2.000000e+00 : f32
    %100 = vector.broadcast %cst_31 : f32 to vector<1x128xf32>
    %101 = arith.addf %99, %100 : vector<1x128xf32>
    %102 = arith.divf %97, %101 : vector<1x128xf32>
    %103 = arith.subf %94, %102 : vector<1x128xf32>
    %104 = arith.divf %91, %103 : vector<1x128xf32>
    %105 = arith.subf %88, %104 : vector<1x128xf32>
    %106 = math.exp %105 : vector<1x128xf32>
    %107 = arith.mulf %105, %106 : vector<1x128xf32>
    %108 = arith.subf %107, %28 : vector<1x128xf32>
    %cst_32 = arith.constant 1.000000e+00 : f32
    %109 = vector.broadcast %cst_32 : f32 to vector<1x128xf32>
    %110 = arith.addf %105, %109 : vector<1x128xf32>
    %111 = arith.mulf %106, %110 : vector<1x128xf32>
    %cst_33 = arith.constant 2.000000e+00 : f32
    %112 = vector.broadcast %cst_33 : f32 to vector<1x128xf32>
    %113 = arith.addf %105, %112 : vector<1x128xf32>
    %114 = arith.mulf %113, %108 : vector<1x128xf32>
    %cst_34 = arith.constant 2.000000e+00 : f32
    %115 = vector.broadcast %cst_34 : f32 to vector<1x128xf32>
    %116 = arith.mulf %115, %105 : vector<1x128xf32>
    %cst_35 = arith.constant 2.000000e+00 : f32
    %117 = vector.broadcast %cst_35 : f32 to vector<1x128xf32>
    %118 = arith.addf %116, %117 : vector<1x128xf32>
    %119 = arith.divf %114, %118 : vector<1x128xf32>
    %120 = arith.subf %111, %119 : vector<1x128xf32>
    %121 = arith.divf %108, %120 : vector<1x128xf32>
    %122 = arith.subf %105, %121 : vector<1x128xf32>
    %cst_36 = arith.constant 0.000000e+00 : f32
    %123 = vector.broadcast %cst_36 : f32 to vector<1x128xf32>
    %124 = arith.subf %123, %122 : vector<1x128xf32>
    %125 = math.exp %124 : vector<1x128xf32>
    %cst_37 = arith.constant 2.30258512 : f32
    %126 = vector.broadcast %cst_37 : f32 to vector<1x128xf32>
    %127 = arith.subf %18, %126 : vector<1x128xf32>
    %128 = arith.mulf %127, %125 : vector<1x128xf32>
    %129 = arith.mulf %122, %122 : vector<1x128xf32>
    %cst_38 = arith.constant 1.000000e+00 : f32
    %130 = vector.broadcast %cst_38 : f32 to vector<1x128xf32>
    %131 = arith.mulf %130, %129 : vector<1x128xf32>
    %132 = arith.addf %128, %131 : vector<1x128xf32>
    %c128_i32 = arith.constant 128 : i32
    %133 = arith.muli %arg0, %c128_i32 : i32
    %134 = tpu.iota {dimensions = array<i32: 1>} : vector<1x128xi32>
    %135 = vector.broadcast %133 : i32 to vector<1x128xi32>
    %136 = arith.addi %135, %134 : vector<1x128xi32>
    %c8_i32 = arith.constant 8 : i32
    %137 = vector.broadcast %c8_i32 : i32 to vector<1x128xi32>
    %138 = arith.cmpi slt, %136, %137 : vector<1x128xi32>
    %cst_39 = arith.constant 0.000000e+00 : f32
    %139 = vector.broadcast %cst_39 : f32 to vector<1x128xf32>
    %140 = arith.select %138, %132, %139 : vector<1x128xi1>, vector<1x128xf32>
    %c0_40 = arith.constant 0 : index
    %c0_41 = arith.constant 0 : index
    %141 = vector.load %arg3[%c0_40, %c0_41] : memref<1x128xf32, #tpu.memory_space<vmem>>, vector<1x128xf32>
    tpu.vector_store %arg3[%c0_40, %c0_41], %140 {strides = array<i32>} : memref<1x128xf32, #tpu.memory_space<vmem>>, vector<1x128xf32>,
    return
  }
  func.func @transform_0(%arg0: i32) -> (i32, i32) {
    %c0_i32 = arith.constant 0 : i32
    %c0_i32_0 = arith.constant 0 : i32
    return %c0_i32, %arg0 : i32, i32
  }
  func.func @transform_1(%arg0: i32) -> (i32, i32) {
    %c0_i32 = arith.constant 0 : i32
    %c0_i32_0 = arith.constant 0 : i32
    return %c0_i32, %arg0 : i32, i32
  }
  func.func @transform_2(%arg0: i32) -> (i32, i32) {
    %c0_i32 = arith.constant 0 : i32
    %c0_i32_0 = arith.constant 0 : i32
    return %c0_i32, %arg0 : i32, i32
  }
}

</mosaic_0001>

<bundles_post_ra>
// kernel: tpu_custom_call.1
= control target key start
LH: loop header
LB: loop body
LE: loop exit
PB: predicated region body
PF: predicated region fallthrough
CT: control target
= control target key end

     0   :  { %7 = vsyncpa [#allocation3], 0  ;;  %s336_s0 = inlined_call_operand.hbm [shape: f32[10,128], index: 0, kind: input, shape index: {}]   ;;  %s337_s1 = inlined_call_operand.vmem [shape: s32[1,128], index: 1, kind: input, shape index: {}]   ;;  %s338_s2 = inlined_call_operand.hbm [shape: f32[1,128], index: 2, kind: output, shape index: {}]  }
   0x1   :  { %8 = vsyncpa [#allocation4], 0  ;;  %s290_s9 = smov [#allocation2]  }
   0x2   :  { %s14_s10 = sshll.u32 %s290_s9, 4  ;;  %s15_s10 = int_to_ptr.vmem [resolvable:$true] %s14_s10 }
   0x3   :  { %s254_s11 = scalar_lea.vmem %s15_s10, 256  ;;  %p259_p1 = scmp.lt.s32.totalorder %s15_s10, %s15_s10 }
   0x4   :  { %p255_p0 = scmp.ne.s32.totalorder %s15_s10, %s254_s11  ;;  %p260_p2 = scmp.lt.s32.totalorder %s254_s11, %s254_s11 }
   0x6   :  { %p261_p3 = por %p260_p2, %p259_p1 }
   0x8   :  { %p262_p4 = pnand %p261_p3, %p255_p0 }
   0xa   :  { %265 = shalt.err (!%p262_p4)
}
   0xb   :  { %s291_s12 = smov 128   ;;  %s292_s13 = smov 8  }
   0xc   :  { %20 = dma.hbm_to_vmem [thread:$0]  %s336_s0, 256, %s15_s10, [#allocation3], %s291_s12, %s291_s12, %s292_s13  }
   0xd   :  { %286 = dma.done.wait [#allocation3], 256  }
   0xe   :  { %287 = vsyncadd [#allocation3], 4294967040  ;;  %vm29_vm0 = vcmask 1041408   ;;  %v26_v0 = vld [vmem:[#allocation2] sm:$0xff]  ;;  %v27_v1 = vld [vmem:[#allocation2 + $0x8] sm:$0x3]  ;;  %v55_v14 = vlaneseq }
   0xf   :  { %v30_v2 = vsel %vm29_vm0, %v27_v1, -inf  ;;  %v204_v17 = vld [vmem:[%s337_s1] ss:$0 sm:$0xff]  ;;  %s293_s1 = smov [#allocation5]  }
  0x10   :  { %v31_v3 = vmax.f32 %v26_v0, %v30_v2  ;;  %v56_v15 = vshrl.u32 %v55_v14, 7  ;;  %s195_s17 = sshll.u32 %s293_s1, 4  ;;  %s196_s17 = int_to_ptr.vmem [resolvable:$true] %s195_s17 }
  0x11   :  { %s266_s18 = scalar_lea.vmem %s196_s17, 16  ;;  %s270_s19 = scalar_lea.vmem %s196_s17, 32 }
  0x12   :  { %v32_v4 = vrot.slane %v31_v3, 4  ;;  %v57_v16 = vadd.s32 8, %v56_v15  ;;  %vm62_vm2 = vcmp.eq.s32.totalorder %v56_v15, %v204_v17  ;;  %p267_p5 = scmp.ne.s32.totalorder %s196_s17, %s266_s18  ;;  %p271_p6 = scmp.lt.s32.totalorder %s196_s17, %s196_s17 }
  0x13   :  { %v64_v23 = vsel %vm62_vm2, %v26_v0, 0.0  ;;  %p272_p7 = scmp.lt.s32.totalorder %s270_s19, %s266_s18 }
  0x14   :  { %v33_v5 = vmax.f32 %v31_v3, %v32_v4  ;;  %vm63_vm1 = vcmp.eq.s32.totalorder %v57_v16, %v204_v17 }
  0x15   :  { %v65_v20 = vsel %vm63_vm1, %v27_v1, 0.0  ;;  %p273_p8 = por %p272_p7, %p271_p6 }
  0x16   :  { %v34_v6 = vrot.slane %v33_v5, 2  ;;  %v66_v24 = vsel %vm29_vm0, %v65_v20, 0.0 }
  0x17   :  { %v67_v27 = vadd.f32 %v66_v24, %v64_v23  ;;  %p274_p9 = pnand %p273_p8, %p267_p5 }
  0x18   :  { %v35_v7 = vmax.f32 %v33_v5, %v34_v6 }
  0x19   :  { %v68_v30 = vrot.slane %v67_v27, 4 }
  0x1a   :  { %v36_v8 = vrot.slane %v35_v7, 1 }
  0x1b   :  { %v69_v33 = vadd.f32 %v68_v30, %v67_v27 }
  0x1c   :  { %v37_v9 = vmax.f32 %v35_v7, %v36_v8 }
  0x1d   :  { %v70_v34 = vrot.slane %v69_v33, 2 }
  0x1e   :  { %v38_v10 = vsub.f32 %v26_v0, %v37_v9  ;;  %v39_v11 = vsub.f32 %v27_v1, %v37_v9 }
  0x1f   :  { %v71_v35 = vadd.f32 %v70_v34, %v69_v33 }
  0x20   :  { %v40_v12 = vmul.f32 1.442695, %v38_v10  ;;  %v42_v13 = vmul.f32 1.442695, %v39_v11 }
  0x21   :  { %v72_v36 = vrot.slane %v71_v35, 1 }
  0x22   :  { %210 = vpow2.f32 %v40_v12 }
  0x23   :  { %212 = vpow2.f32 %v42_v13  ;;  %v73_v39 = vadd.f32 %v72_v36, %v71_v35 }
  0x2f   :  { %v211_v18 = vpop.eup %210 }
  0x30   :  { %v213_v19 = vpop.eup %212 }
  0x31   :  { %v44_v21 = vsel %vm29_vm0, %v213_v19, 0.0 }
  0x32   :  { %v45_v22 = vadd.f32 %v211_v18, %v44_v21 }
  0x34   :  { %v46_v25 = vrot.slane %v45_v22, 4 }
  0x36   :  { %v47_v26 = vadd.f32 %v46_v25, %v45_v22 }
  0x38   :  { %v48_v28 = vrot.slane %v47_v26, 2 }
  0x3a   :  { %v49_v29 = vadd.f32 %v48_v28, %v47_v26 }
  0x3c   :  { %v50_v31 = vrot.slane %v49_v29, 1 }
  0x3e   :  { %v51_v32 = vadd.f32 %v50_v31, %v49_v29 }
  0x40   :  { %214 = vlog2.f32 %v51_v32 }
  0x4d   :  { %v215_v37 = vpop.eup %214 }
  0x4e   :  { %v53_v38 = vmul.f32 0.6931472, %v215_v37 }
  0x50   :  { %v54_v40 = vadd.f32 %v53_v38, %v37_v9 }
  0x52   :  { %v74_v41 = vsub.f32 %v54_v40, %v73_v39 }
  0x54   :  { %v319_v42 = vadd.f32 -2.3025851, %v74_v41 }
  0x56   :  { %v76_v43 = vmax.f32 %v319_v42, -0.7357589 }
  0x58   :  { %v77_v44 = vmul.f32 0.5, %v76_v43 }
  0x5a   :  { %v322_v45 = vmax.f32 %v77_v44, -0.36787906 }
  0x5c   :  { %v79_v46 = vmul.f32 2.7182817, %v322_v45  ;;  %v99_v48 = vmax.f32 %v322_v45, 0.0  ;;  %vm109_vm6 = vcmp.lt.f32.partialorder %v322_v45, 0.0 }
  0x5e   :  { %v80_v47 = vadd.f32 1.0, %v79_v46  ;;  %v100_v51 = vadd.f32 1.0, %v99_v48  ;;  %v103_v52 = vmul.f32 -0.5, %v99_v48  ;;  %v106_v59 = vand.u32 2147483647, %v99_v48 }
  0x60   :  { %v81_v49 = vmul.f32 2.0, %v80_v47  ;;  %v104_v56 = vadd.f32 1.0, %v103_v52  ;;  %vm107_vm5 = vcmp.lt.f32.partialorder %v106_v59, 0.0004427343 }
  0x62   :  { %v82_v50 = vmax.f32 %v81_v49, 0.0  ;;  %v105_v1 = vmul.f32 %v104_v56, %v99_v48 }
  0x64   :  { %216 = vrsqrt.f32 %v82_v50  ;;  %vm85_vm3 = vcmp.eq.f32.partialorder %v82_v50, inf  ;;  %v88_v54 = vand.u32 2147483648, %v82_v50  ;;  %vm87_vm4 = vcmp.eq.f32.partialorder %v82_v50, 0.0 }
  0x65   :  { %218 = vlog2.f32 %v100_v51 }
  0x71   :  { %v217_v53 = vpop.eup %216 }
  0x72   :  { %v84_v55 = vmul.f32 %v217_v53, %v82_v50  ;;  %v219_v57 = vpop.eup %218 }
  0x73   :  { %v102_v0 = vmul.f32 0.6931472, %v219_v57 }
  0x74   :  { %v86_v58 = vsel %vm85_vm3, %v82_v50, %v84_v55 }
  0x75   :  { %v89_v60 = vsel %vm87_vm4, %v88_v54, %v86_v58  ;;  %v108_v6 = vsel %vm107_vm5, %v105_v1, %v102_v0 }
  0x76   :  { %v90_v61 = vadd.f32 -1.0, %v89_v60  ;;  %v91_v62 = vmul.f32 %v89_v60, %v89_v60  ;;  %v95_v63 = vmul.f32 0.15277778, %v89_v60 }
  0x78   :  { %v93_v2 = vmul.f32 0.33333334, %v91_v62  ;;  %v96_v3 = vmul.f32 %v95_v63, %v89_v60 }
  0x7a   :  { %v94_v4 = vsub.f32 %v90_v61, %v93_v2  ;;  %v97_v5 = vmul.f32 %v96_v3, %v89_v60 }
  0x7c   :  { %v98_v7 = vadd.f32 %v97_v5, %v94_v4 }
  0x7e   :  { %v110_v8 = vsel %vm109_vm6, %v98_v7, %v108_v6 }
  0x7f   :  { %v111_v9 = vmul.f32 1.442695, %v110_v8  ;;  %v119_v10 = vmul.f32 2.0, %v110_v8  ;;  %v115_v15 = vadd.f32 1.0, %v110_v8  ;;  %v117_v16 = vadd.f32 2.0, %v110_v8 }
  0x81   :  { %220 = vpow2.f32 %v111_v9  ;;  %v120_v11 = vadd.f32 2.0, %v119_v10 }
  0x83   :  { %222 = vrcp.f32 %v120_v11 }
  0x8e   :  { %v221_v12 = vpop.eup %220 }
  0x8f   :  { %v113_v13 = vmul.f32 %v221_v12, %v110_v8  ;;  %v116_v19 = vmul.f32 %v221_v12, %v115_v15  ;;  %v183_v15 = vand.u32 127, %v55_v14 }
  0x90   :  { %v223_v18 = vpop.eup %222 }
  0x91   :  { %v114_v17 = vsub.f32 %v113_v13, %v322_v45  ;;  %vm186_vm7 = vcmp.lt.s32.totalorder %v183_v15, 8 }
  0x93   :  { %v118_v20 = vmul.f32 %v117_v16, %v114_v17 }
  0x95   :  { %v122_v21 = vmul.f32 %v223_v18, %v118_v20 }
  0x97   :  { %v123_v22 = vsub.f32 %v116_v19, %v122_v21 }
  0x99   :  { %224 = vrcp.f32 %v123_v22 }
  0xa6   :  { %v225_v23 = vpop.eup %224 }
  0xa7   :  { %v125_v24 = vmul.f32 %v225_v23, %v114_v17 }
  0xa9   :  { %v126_v25 = vsub.f32 %v110_v8, %v125_v24 }
  0xab   :  { %v127_v26 = vmul.f32 1.442695, %v126_v25  ;;  %v135_v27 = vmul.f32 2.0, %v126_v25  ;;  %v131_v31 = vadd.f32 1.0, %v126_v25  ;;  %v133_v32 = vadd.f32 2.0, %v126_v25 }
  0xad   :  { %226 = vpow2.f32 %v127_v26  ;;  %v136_v28 = vadd.f32 2.0, %v135_v27 }
  0xaf   :  { %228 = vrcp.f32 %v136_v28 }
  0xba   :  { %v227_v29 = vpop.eup %226 }
  0xbb   :  { %v129_v30 = vmul.f32 %v227_v29, %v126_v25  ;;  %v132_v35 = vmul.f32 %v227_v29, %v131_v31 }
  0xbc   :  { %v229_v34 = vpop.eup %228 }
  0xbd   :  { %v130_v33 = vsub.f32 %v129_v30, %v322_v45 }
  0xbf   :  { %v134_v36 = vmul.f32 %v133_v32, %v130_v33 }
  0xc1   :  { %v138_v37 = vmul.f32 %v229_v34, %v134_v36 }
  0xc3   :  { %v139_v38 = vsub.f32 %v132_v35, %v138_v37 }
  0xc5   :  { %230 = vrcp.f32 %v139_v38 }
  0xd2   :  { %v231_v39 = vpop.eup %230 }
  0xd3   :  { %v141_v40 = vmul.f32 %v231_v39, %v130_v33 }
  0xd5   :  { %v142_v41 = vsub.f32 %v126_v25, %v141_v40 }
  0xd7   :  { %v143_v43 = vmul.f32 1.442695, %v142_v41  ;;  %v151_v44 = vmul.f32 2.0, %v142_v41  ;;  %v147_v49 = vadd.f32 1.0, %v142_v41  ;;  %v149_v50 = vadd.f32 2.0, %v142_v41 }
  0xd9   :  { %232 = vpow2.f32 %v143_v43  ;;  %v152_v46 = vadd.f32 2.0, %v151_v44 }
  0xdb   :  { %234 = vrcp.f32 %v152_v46 }
  0xe6   :  { %v233_v47 = vpop.eup %232 }
  0xe7   :  { %v145_v48 = vmul.f32 %v233_v47, %v142_v41  ;;  %v148_v53 = vmul.f32 %v233_v47, %v147_v49 }
  0xe8   :  { %v235_v52 = vpop.eup %234 }
  0xe9   :  { %v146_v51 = vsub.f32 %v145_v48, %v322_v45 }
  0xeb   :  { %v150_v54 = vmul.f32 %v149_v50, %v146_v51 }
  0xed   :  { %v154_v55 = vmul.f32 %v235_v52, %v150_v54 }
  0xef   :  { %v155_v56 = vsub.f32 %v148_v53, %v154_v55 }
  0xf1   :  { %236 = vrcp.f32 %v155_v56 }
  0xfe   :  { %v237_v57 = vpop.eup %236 }
  0xff   :  { %v157_v58 = vmul.f32 %v237_v57, %v146_v51 }
 0x101   :  { %v158_v59 = vsub.f32 %v142_v41, %v157_v58 }
 0x103   :  { %v159_v60 = vmul.f32 1.442695, %v158_v59  ;;  %v167_v61 = vmul.f32 2.0, %v158_v59  ;;  %v163_v1 = vadd.f32 1.0, %v158_v59  ;;  %v165_v2 = vadd.f32 2.0, %v158_v59 }
 0x105   :  { %238 = vpow2.f32 %v159_v60  ;;  %v168_v62 = vadd.f32 2.0, %v167_v61 }
 0x107   :  { %240 = vrcp.f32 %v168_v62 }
 0x112   :  { %v239_v63 = vpop.eup %238 }
 0x113   :  { %v161_v0 = vmul.f32 %v239_v63, %v158_v59  ;;  %v164_v5 = vmul.f32 %v239_v63, %v163_v1 }
 0x114   :  { %v241_v4 = vpop.eup %240 }
 0x115   :  { %v162_v3 = vsub.f32 %v161_v0, %v322_v45 }
 0x117   :  { %v166_v6 = vmul.f32 %v165_v2, %v162_v3 }
 0x119   :  { %v170_v7 = vmul.f32 %v241_v4, %v166_v6 }
 0x11b   :  { %v171_v8 = vsub.f32 %v164_v5, %v170_v7 }
 0x11d   :  { %242 = vrcp.f32 %v171_v8 }
 0x12a   :  { %v243_v9 = vpop.eup %242 }
 0x12b   :  { %v173_v10 = vmul.f32 %v243_v9, %v162_v3 }
 0x12d   :  { %v174_v11 = vsub.f32 %v158_v59, %v173_v10 }
 0x12f   :  { %v175_v12 = vsub.f32 0.0, %v174_v11  ;;  %v179_v16 = vmul.f32 %v174_v11, %v174_v11 }
 0x131   :  { %v176_v13 = vmul.f32 1.442695, %v175_v12 }
 0x133   :  { %244 = vpow2.f32 %v176_v13 }
 0x140   :  { %v245_v17 = vpop.eup %244 }
 0x141   :  { %v178_v18 = vmul.f32 %v245_v17, %v319_v42 }
 0x143   :  { %v180_v45 = vadd.f32 %v179_v16, %v178_v18 }
 0x145   :  { %v187_v19 = vsel %vm186_vm7, %v180_v45, 0.0 }
 0x146   :  { %188 = vst [vmem:[#allocation5] sm:$0x1] %v187_v19 }
 0x147   :  { %277 = shalt.err (!%p274_p9)
}
 0x148   :  { %198 = dma.vmem_to_hbm [thread:$0]  %s196_s17, 16, %s338_s2, [#allocation4]  }
 0x149   :  { %288 = dma.done.wait [#allocation4], 16  }
 0x14a   :  { %289 = vsyncadd [#allocation4], 4294967280 }
 0x14b   :  { %202 = vsyncpa [#allocation3], 1 }
 0x14c   :  { %203 = vsyncpa [#allocation4], 1 }

</bundles_post_ra>
